<compile_context>
chip_gen: v6e
topology: v6e:2x2x1
jax: 0.10.0
libtpu: 0.0.40
codegen_flags: <defaults>
</compile_context>

<pallas_src>
import functools

import jax
import jax.numpy as jnp
from jax.experimental import pallas as pl
from jax.experimental.pallas import tpu as pltpu


def _fold_partial(x):
    """(rt, n) f32 -> (8, 128) partial sums using only cross-vreg VPU adds."""
    rt, n = x.shape
    # sublane-group fold: rows r and r+8 share lane/sublane positions -> vreg adds
    x = jnp.sum(x.reshape(rt // 8, 8, n), axis=0)          # (8, n)
    # lane-group fold: 128-lane aligned slices are whole vregs -> vreg adds
    acc = x[:, 0:128]
    for g in range(1, n // 128):
        acc = acc + x[:, g * 128:(g + 1) * 128]
    return acc                                              # (8, 128)


def _loss_kernel(pred_ref, tgt_ref, mask_ref, *out_refs,
                 weighted, ignored_index, need_cnt, total_rows, row_tile):
    sum_ref = out_refs[0]

    # Cast inside the kernel; inputs stream from HBM in their native dtype.
    p = pred_ref[...].astype(jnp.float32)
    t = tgt_ref[...].astype(jnp.float32)

    if weighted:
        m = mask_ref[...].astype(jnp.float32)               # continuous weights
    else:
        m = (mask_ref[...] != 0).astype(jnp.float32)        # binary validity

    # Compare against the original ignored_index value (static) in f32.
    valid = jnp.where(t != jnp.float32(ignored_index), m, 0.0)

    # Tail-row masking (statically compiled in only when row_tile doesn't divide B).
    if total_rows % row_tile != 0:
        row0 = pl.program_id(0) * row_tile
        rid = jax.lax.broadcasted_iota(jnp.int32, (row_tile, 1), 0) + row0
        valid = jnp.where(rid < total_rows, valid, 0.0)

    diff = p - t
    loss = diff * diff * valid                               # element-wise loss term

    sum_ref[...] = _fold_partial(loss)[None]                 # (1, 8, 128)
    if need_cnt:
        out_refs[1][...] = _fold_partial(valid)[None]


def _tpu_vmem_bytes():
    try:
        return int(pltpu.get_tpu_info().vmem_capacity_bytes)
    except Exception:
        return 64 << 20      # conservative (v7x-sized) fallback


def _pick_row_tile(B, N, max_itemsize, row_pack, target_bytes):
    """Row tile giving ~target_bytes per (largest) input, >=2 blocks when possible."""
    rows = max(row_pack, target_bytes // max(1, N * max_itemsize))
    rows = min(int(rows), B)
    if B >= 16:
        # keep >= 2 grid steps so the 'parallel' axis feeds both v7x TensorCores
        rows = min(rows, max(8, (B // 2 // 8) * 8))
    r = (rows // row_pack) * row_pack        # packed-sublane multiple (bf16=16, i8=32)
    if r == 0:
        r = (rows // 8) * 8
    return max(r, 8)


@functools.partial(jax.jit,
                   static_argnames=("ignored_index", "reduction", "weighted"))
def masked_loss(prediction, target, mask, ignored_index=0,
                reduction="sum", weighted=False):
    """Pallas TPU implementation of the (masked, reduced) loss forward."""
    B, N = prediction.shape
    assert B % 8 == 0 and N % 128 == 0, "use lane/sublane aligned shapes"
    if reduction not in ("sum", "mean"):
        raise ValueError(f"unsupported reduction: {reduction}")
    need_cnt = (reduction == "mean")

    itemsizes = (prediction.dtype.itemsize, target.dtype.itemsize,
                 mask.dtype.itemsize)
    max_itemsize = max(itemsizes)
    row_pack = max(8, 32 // min(itemsizes))   # 8 for f32, 16 for bf16, 32 for i8

    vmem_cap = _tpu_vmem_bytes()
    # bigger blocks on 128 MiB-VMEM parts (v5e/v6e), capped on 64 MiB v7x
    target_bytes = (6 << 20) if vmem_cap >= (96 << 20) else (3 << 20)

    row_tile = _pick_row_tile(B, N, max_itemsize, row_pack, target_bytes)
    num_blocks = pl.cdiv(B, row_tile)

    in_spec = pl.BlockSpec((row_tile, N), lambda i: (i, 0))
    out_spec = pl.BlockSpec((1, 8, 128), lambda i: (i, 0, 0))
    out_struct = jax.ShapeDtypeStruct((num_blocks, 8, 128), jnp.float32)

    n_out = 2 if need_cnt else 1
    in_block_bytes = row_tile * N * sum(itemsizes)
    out_block_bytes = 8 * 128 * 4 * n_out
    vmem_limit = 2 * (in_block_bytes + out_block_bytes) + (2 << 20)
    vmem_limit = max(vmem_limit, 4 << 20)
    vmem_limit = min(vmem_limit, max(4 << 20, vmem_cap * 3 // 4))

    bytes_in = sum(a.size * a.dtype.itemsize for a in (prediction, target, mask))
    bytes_out = num_blocks * out_block_bytes
    cost = pl.CostEstimate(flops=5 * B * N, transcendentals=0,
                           bytes_accessed=bytes_in + bytes_out)

    kernel = functools.partial(_loss_kernel, weighted=weighted,
                               ignored_index=ignored_index, need_cnt=need_cnt,
                               total_rows=B, row_tile=row_tile)

    outs = pl.pallas_call(
        kernel,
        out_shape=[out_struct] * n_out,
        grid=(num_blocks,),
        in_specs=[in_spec, in_spec, in_spec],
        out_specs=[out_spec] * n_out,
        compiler_params=pltpu.CompilerParams(
            dimension_semantics=("parallel",),        # megacore-shardable on v7x
            vmem_limit_bytes=int(vmem_limit)),
        cost_estimate=cost,
    )(prediction, target, mask)

    # Tiny final reduction over per-block (8, 128) vreg-shaped partials.
    s = jnp.sum(outs[0])
    if reduction == "sum":
        return s
    c = jnp.sum(outs[1])
    return s / jnp.maximum(c, 1.0)


def _reference(prediction, target, mask, ignored_index=0,
               reduction="sum", weighted=False):
    mask = mask.astype(jnp.float32)
    if not weighted:
        mask = (mask != 0).astype(jnp.float32)
    valid = jnp.where(target != ignored_index, 1.0, 0.0) * mask
    loss = (prediction.astype(jnp.float32) - target.astype(jnp.float32)) ** 2 * valid
    if reduction == "sum":
        return jnp.sum(loss)
    return jnp.sum(loss) / jnp.maximum(jnp.sum(valid), 1.0)


if __name__ == "__main__":
    key = jax.random.PRNGKey(0)
    k1, k2, k3 = jax.random.split(key, 3)

    B, N = 16, 256                      # small, lane/sublane aligned
    prediction = jax.random.normal(k1, (B, N), dtype=jnp.float32)
    # targets with some entries equal to the ignored_index (0)
    target = jnp.round(jax.random.normal(k2, (B, N), dtype=jnp.float32) * 2.0)
    mask = (jax.random.uniform(k3, (B, N)) > 0.3).astype(jnp.float32)

    # 'sum' reduction (binary mask)
    out = jax.block_until_ready(
        masked_loss(prediction, target, mask, 0, "sum", False))
    ref = _reference(prediction, target, mask, 0, "sum", False)
    assert jnp.allclose(out, ref, rtol=1e-5, atol=1e-4), (out, ref)

    # 'mean' reduction
    out_m = jax.block_until_ready(
        masked_loss(prediction, target, mask, 0, "mean", False))
    ref_m = _reference(prediction, target, mask, 0, "mean", False)
    assert jnp.allclose(out_m, ref_m, rtol=1e-5, atol=1e-5), (out_m, ref_m)

    # weighted (continuous mask weights) path
    wmask = jax.random.uniform(k3, (B, N), dtype=jnp.float32)
    out_w = jax.block_until_ready(
        masked_loss(prediction, target, wmask, 0, "mean", True))
    ref_w = _reference(prediction, target, wmask, 0, "mean", True)
    assert jnp.allclose(out_w, ref_w, rtol=1e-5, atol=1e-5), (out_w, ref_w)

    # narrow (bool) mask at the call site — recommended: ~25-30% less HBM traffic
    bmask = mask != 0
    out_b = jax.block_until_ready(
        masked_loss(prediction, target, bmask, 0, "sum", False))
    assert jnp.allclose(out_b, ref, rtol=1e-5, atol=1e-4), (out_b, ref)

    print("KERNEL_OK")
</pallas_src>

<mosaic_0001>
module attributes {stable_mosaic.version = 11 : i64} {
  func.func @_loss_kernel(%arg0: i32, %arg1: memref<8x256xf32, #tpu.memory_space<vmem>>, %arg2: memref<8x256xf32, #tpu.memory_space<vmem>>, %arg3: memref<8x256xf32, #tpu.memory_space<vmem>>, %arg4: memref<1x8x128xf32, #tpu.memory_space<vmem>>) attributes {dimension_semantics = [#tpu.dimension_semantics<parallel>], iteration_bounds = array<i64: 2>, scalar_prefetch = 0 : i64, scratch_operands = 0 : i64, tpu.core_type = #tpu.core_type<tc>, window_params = [{transform_indices = @transform_0, window_bounds = array<i64: 8, 256>}, {transform_indices = @transform_1, window_bounds = array<i64: 8, 256>}, {transform_indices = @transform_2, window_bounds = array<i64: 8, 256>}, {transform_indices = @transform_3, window_bounds = array<i64: 1, 8, 128>}]} {
    %c0 = arith.constant 0 : index
    %c0_0 = arith.constant 0 : index
    %0 = vector.load %arg1[%c0, %c0_0] : memref<8x256xf32, #tpu.memory_space<vmem>>, vector<8x256xf32>
    %c0_1 = arith.constant 0 : index
    %c0_2 = arith.constant 0 : index
    %1 = vector.load %arg2[%c0_1, %c0_2] : memref<8x256xf32, #tpu.memory_space<vmem>>, vector<8x256xf32>
    %c0_3 = arith.constant 0 : index
    %c0_4 = arith.constant 0 : index
    %2 = vector.load %arg3[%c0_3, %c0_4] : memref<8x256xf32, #tpu.memory_space<vmem>>, vector<8x256xf32>
    %cst = arith.constant 0.000000e+00 : f32
    %3 = vector.broadcast %cst : f32 to vector<8x256xf32>
    %4 = arith.cmpf one, %2, %3 : vector<8x256xf32>
    %5 = arith.extui %4 : vector<8x256xi1> to vector<8x256xi32>
    %6 = arith.sitofp %5 : vector<8x256xi32> to vector<8x256xf32>
    %cst_5 = arith.constant 0.000000e+00 : f32
    %7 = vector.broadcast %cst_5 : f32 to vector<8x256xf32>
    %8 = arith.cmpf one, %1, %7 : vector<8x256xf32>
    %cst_6 = arith.constant 0.000000e+00 : f32
    %9 = vector.broadcast %cst_6 : f32 to vector<8x256xf32>
    %10 = arith.select %8, %6, %9 : vector<8x256xi1>, vector<8x256xf32>
    %11 = arith.subf %0, %1 : vector<8x256xf32>
    %12 = arith.mulf %11, %11 : vector<8x256xf32>
    %13 = arith.mulf %12, %10 : vector<8x256xf32>
    %14 = vector.shape_cast %13 : vector<8x256xf32> to vector<1x8x256xf32>
    %cst_7 = arith.constant dense<0.000000e+00> : vector<8x256xf32>
    %15 = vector.multi_reduction <add>, %14, %cst_7 [0] : vector<1x8x256xf32> to vector<8x256xf32>
    %16 = vector.extract_strided_slice %15 {offsets = [0, 0], sizes = [8, 128], strides = [1, 1]} : vector<8x256xf32> to vector<8x128xf32>
    %17 = vector.extract_strided_slice %15 {offsets = [0, 128], sizes = [8, 128], strides = [1, 1]} : vector<8x256xf32> to vector<8x128xf32>
    %18 = arith.addf %16, %17 : vector<8x128xf32>
    %19 = vector.shape_cast %18 : vector<8x128xf32> to vector<1x8x128xf32>
    %c0_8 = arith.constant 0 : index
    %c0_9 = arith.constant 0 : index
    %c0_10 = arith.constant 0 : index
    %20 = vector.load %arg4[%c0_8, %c0_9, %c0_10] : memref<1x8x128xf32, #tpu.memory_space<vmem>>, vector<1x8x128xf32>
    tpu.vector_store %arg4[%c0_8, %c0_9, %c0_10], %19 {strides = array<i32>} : memref<1x8x128xf32, #tpu.memory_space<vmem>>, vector<1x8x128xf32>,
    return
  }
  func.func @transform_0(%arg0: i32) -> (i32, i32) {
    %c0_i32 = arith.constant 0 : i32
    %c0_i32_0 = arith.constant 0 : i32
    return %arg0, %c0_i32 : i32, i32
  }
  func.func @transform_1(%arg0: i32) -> (i32, i32) {
    %c0_i32 = arith.constant 0 : i32
    %c0_i32_0 = arith.constant 0 : i32
    return %arg0, %c0_i32 : i32, i32
  }
  func.func @transform_2(%arg0: i32) -> (i32, i32) {
    %c0_i32 = arith.constant 0 : i32
    %c0_i32_0 = arith.constant 0 : i32
    return %arg0, %c0_i32 : i32, i32
  }
  func.func @transform_3(%arg0: i32) -> (i32, i32, i32) {
    %c0_i32 = arith.constant 0 : i32
    %c0_i32_0 = arith.constant 0 : i32
    %c0_i32_1 = arith.constant 0 : i32
    return %arg0, %c0_i32, %c0_i32_0 : i32, i32, i32
  }
}

</mosaic_0001>

<bundles_post_ra>
// kernel: masked_loss.1
= control target key start
LH: loop header
LB: loop body
LE: loop exit
PB: predicated region body
PF: predicated region fallthrough
CT: control target
= control target key end

     0   :  { %8 = vsyncpa [#allocation3], 0  ;;  %s790_s0 = inlined_call_operand.hbm [shape: f32[16,256], index: 0, kind: input, shape index: {}]   ;;  %s791_s1 = inlined_call_operand.hbm [shape: f32[16,256], index: 1, kind: input, shape index: {}]   ;;  %s792_s2 = inlined_call_operand.hbm [shape: f32[16,256], index: 2, kind: input, shape index: {}]   ;;  %s793_s3 = inlined_call_operand.vmem [shape: f32[2,8,128], index: 3, kind: output, shape index: {}]  }
   0x1   :  { %10 = vsyncpa [#allocation3 + $0x1], 0 }
   0x2   :  { %11 = vsyncpa [#allocation5], 0 }
   0x3   :  { %13 = vsyncpa [#allocation5 + $0x1], 0  ;;  %s616_s12 = smov 0   ;;  %s618_s13 = smov 0  }
   0x4   :  { %s620_s14 = smov 0   ;;  %s622_s15 = smov 0  }
   0x5 LB: > { %s635_s16 = sadd.s32 4294967295, %s590_s15   ;;  %s638_s17 = sadd.s32 1, %s590_s15   ;;  %s590_s15 = sphi %s622_s15, %s806_s15   ;;  %s586_s14 = sphi %s620_s14, %s805_s14   ;;  %s582_s13 = sphi %s618_s13, %s804_s13   ;;  %s578_s12 = sphi %s616_s12, %s803_s12  }
   0x6   : > { %s23_s18 = ssub.s32 %s590_s15, %s638_s17  ;;  %s26_s19 = sadd.s32 1, %s586_s14 }
   0x7   : > { %p24_p0 = scmp.eq.s32.totalorder %s23_s18, 0  ;;  %p33_p1 = scmp.ne.s32.totalorder %s586_s14, %s582_s13 }
   0x8   : > { %p34_p2 = scmp.eq.s32.totalorder %s590_s15, 0  ;;  %p39_p3 = scmp.ne.s32.totalorder %s582_s13, %s578_s12 }
   0x9   : > { %s648_s20 = scalar_select %p24_p0, %s586_s14, %s26_s19  }
   0xa   : > { %p35_p4 = por %p34_p2, %p33_p1  ;;  %p40_p5 = scmp.eq.s32.totalorder %s635_s16, 0 }
   0xb   : > { %p434_p6 = scmp.lt.s32.totalorder %s590_s15, 2  ;;  %s141_s22 = sand.u32 1, %s586_s14  }
   0xc   : > { %p652_p7 = por %p40_p5, %p39_p3  ;;  %s659_s23 = sshll.u32 %s141_s22, 4 }
   0xd   : > { %s662_s24 = sshll.u32 %s590_s15, 8  ;;  %p664_p8 = pnand %p434_p6, %p35_p4 }
   0xe   : > { %s795_s21 = scalar_select %p652_p7, 1, 0 }
   0xf   : > { %s160_s26 = sand.u32 1, %s590_s15   ;;  %s673_s29 = scalar_lea.hbm %s791_s1, %s662_s24 }
  0x10   : > { %s164_s30 = scalar_lea.vmem [#allocation4], %s659_s23  ;;  %s678_s5 = scalar_lea.sflag [#allocation5], %s160_s26 }
  0x11   : > { %s172_s4 = sshll.u32 %s164_s30, 4  ;;  %s468_s6 = scalar_lea.hbm %s673_s29, 256  ;;  %s173_s4 = int_to_ptr.vmem [resolvable:$true] %s172_s4 }
  0x12   : > { %p469_p11 = scmp.ne.s32.totalorder %s673_s29, %s468_s6  ;;  %p684_p12 = pneg %p664_p8 }
  0x13   : > { %s473_s10 = scalar_lea.hbm %s791_s1, 512  ;;  %p474_p1 = scmp.lt.s32.totalorder %s673_s29, %s791_s1 }
  0x14   : > { %p471_p13 = pnand %p684_p12, %p469_p11  ;;  %p475_p2 = scmp.lt.s32.totalorder %s473_s10, %s468_s6 }
  0x16   : > { %p472_p0 = pneg %p471_p13  ;;  %p476_p3 = por %p475_p2, %p474_p1 }
  0x18   : > { %p477_p4 = pnand %p476_p3, %p472_p0 }
  0x1a   : > { %480 = shalt.err (!%p477_p4)
}
  0x1b   : > { %s481_s18 = scalar_lea.vmem %s173_s4, 256  ;;  %s592_s19 = smov [#allocation4]  }
  0x1c   : > { %p482_p5 = scmp.ne.s32.totalorder %s173_s4, %s481_s18  ;;  %s486_s26 = sshll.u32 %s592_s19, 4  ;;  %s487_s26 = int_to_ptr.vmem [resolvable:$false] %s486_s26 }
  0x1d   : > { %s488_s27 = scalar_lea.vmem %s487_s26, 512  ;;  %p489_p11 = scmp.lt.s32.totalorder %s173_s4, %s487_s26 }
  0x1e   : > { %p484_p6 = pnand %p482_p5, %p684_p12  ;;  %p490_p13 = scmp.lt.s32.totalorder %s488_s27, %s481_s18 }
  0x20   : > { %p485_p9 = pneg %p484_p6  ;;  %p491_p10 = por %p490_p13, %p489_p11 }
  0x22   : > { %p492_p7 = pnand %p491_p10, %p485_p9 }
  0x24   : > { %495 = shalt.err (!%p492_p7)
}
  0x25   : > { %430 = dma.hbm_to_vmem [thread:$0]  (!%p664_p8), %s673_s29, 256, %s173_s4, %s678_s5  }
  0x26   : > { %p798_p0 = scmp.lt.s32.totalorder %s590_s15, 3  ;;  %p799_p1 = scmp.ge.s32.totalorder %s590_s15, 1 }
  0x27   : > { %s715_s8 = scalar_lea.hbm %s790_s0, %s662_s24  ;;  %s145_s9 = scalar_lea.vmem [#allocation2], %s659_s23 }
  0x28   : > { %p707_p2 = pnand %p799_p1, %p798_p0  ;;  %s153_s10 = sshll.u32 %s145_s9, 4  ;;  %s154_s10 = int_to_ptr.vmem [resolvable:$true] %s153_s10 }
  0x29   : > { %s722_s29 = scalar_lea.hbm %s792_s2, %s662_s24  ;;  %s142_s15 = scalar_lea.sflag [#allocation3], %s141_s22 }
  0x2a   : > { %s800_s28 = scalar_select %p707_p2, 1, 0 }
  0x2b   : > { %s496_s4 = scalar_lea.hbm %s715_s8, 256  ;;  %s501_s26 = scalar_lea.hbm %s790_s0, 512 }
  0x2c   : > { %p497_p7 = scmp.ne.s32.totalorder %s715_s8, %s496_s4  ;;  %p502_p3 = scmp.lt.s32.totalorder %s715_s8, %s790_s0 }
  0x2d   : > { %p503_p4 = scmp.lt.s32.totalorder %s501_s26, %s496_s4 }
  0x2e   : > { %p499_p9 = pnand %p497_p7, %p684_p12 }
  0x2f   : > { %p504_p5 = por %p503_p4, %p502_p3 }
  0x30   : > { %p500_p10 = pneg %p499_p9 }
  0x32   : > { %p505_p6 = pnand %p504_p5, %p500_p10 }
  0x34   : > { %508 = shalt.err (!%p505_p6)
}
  0x35   : > { %s509_s24 = scalar_lea.vmem %s154_s10, 256  ;;  %s593_s22 = smov [#allocation2]  }
  0x36   : > { %p510_p11 = scmp.ne.s32.totalorder %s154_s10, %s509_s24  ;;  %s514_s6 = sshll.u32 %s593_s22, 4  ;;  %s515_s6 = int_to_ptr.vmem [resolvable:$false] %s514_s6 }
  0x37   : > { %s516_s9 = scalar_lea.vmem %s515_s6, 512  ;;  %p517_p1 = scmp.lt.s32.totalorder %s154_s10, %s515_s6 }
  0x38   : > { %p512_p13 = pnand %p510_p11, %p684_p12  ;;  %p518_p7 = scmp.lt.s32.totalorder %s516_s9, %s509_s24 }
  0x3a   : > { %p513_p0 = pneg %p512_p13  ;;  %p519_p9 = por %p518_p7, %p517_p1 }
  0x3c   : > { %p520_p2 = pnand %p519_p9, %p513_p0 }
  0x3e   : > { %523 = shalt.err (!%p520_p2)
}
  0x3f   : > { %427 = dma.hbm_to_vmem [thread:$0]  (!%p664_p8), %s715_s8, 256, %s154_s10, %s142_s15  }
  0x40   : > { %s183_s11 = scalar_lea.vmem [#allocation6], %s659_s23  ;;  %s524_s4 = scalar_lea.hbm %s722_s29, 256 }
  0x41   : > { %s191_s12 = sshll.u32 %s183_s11, 4  ;;  %p525_p10 = scmp.ne.s32.totalorder %s722_s29, %s524_s4  ;;  %s192_s12 = int_to_ptr.vmem [resolvable:$true] %s191_s12 }
  0x42   : > { %s529_s26 = scalar_lea.hbm %s792_s2, 512  ;;  %p530_p2 = scmp.lt.s32.totalorder %s722_s29, %s792_s2 }
  0x43   : > { %p527_p3 = pnand %p525_p10, %p684_p12  ;;  %p531_p5 = scmp.lt.s32.totalorder %s529_s26, %s524_s4 }
  0x45   : > { %p528_p4 = pneg %p527_p3  ;;  %p532_p6 = por %p531_p5, %p530_p2 }
  0x47   : > { %p533_p11 = pnand %p532_p6, %p528_p4 }
  0x49   : > { %536 = shalt.err (!%p533_p11)
}
  0x4a   : > { %s537_s23 = scalar_lea.vmem %s192_s12, 256  ;;  %s594_s8 = smov [#allocation6]  }
  0x4b   : > { %p538_p13 = scmp.ne.s32.totalorder %s192_s12, %s537_s23  ;;  %s542_s10 = sshll.u32 %s594_s8, 4  ;;  %s543_s10 = int_to_ptr.vmem [resolvable:$false] %s542_s10 }
  0x4c   : > { %s544_s15 = scalar_lea.vmem %s543_s10, 512  ;;  %p545_p7 = scmp.lt.s32.totalorder %s192_s12, %s543_s10 }
  0x4d   : > { %p540_p0 = pnand %p538_p13, %p684_p12  ;;  %p546_p9 = scmp.lt.s32.totalorder %s544_s15, %s537_s23 }
  0x4f   : > { %p541_p1 = pneg %p540_p0  ;;  %p547_p10 = por %p546_p9, %p545_p7 }
  0x51   : > { %p548_p3 = pnand %p547_p10, %p541_p1 }
  0x53   : > { %551 = shalt.err (!%p548_p3)
}
  0x54   : > { %433 = dma.hbm_to_vmem [thread:$0]  (!%p664_p8), %s722_s29, 256, %s192_s12, %s678_s5  }
  0x55   : > { %p801_p4 = scmp.ne.s32.totalorder %s800_s28, 0 }
  0x56   : > { %s202_s7 = sand.u32 (!%p801_p4), 1, %s582_s13   ;;  %p802_p12 = scmp.ne.s32.totalorder (!%p801_p4), %s795_s21, 0 }
  0x57   : > { %200 = sbr.rel (%p801_p4) target bundleno = 107 (0x6b), region = 32  ;;  %s407_s24 = sshll.u32 (!%p801_p4), %s202_s7, 4 }
  0x58   : > { %s203_s22 = scalar_lea.sflag (!%p801_p4), [#allocation3], %s202_s7  ;;  %s206_s6 = scalar_lea.vmem (!%p801_p4), [#allocation2], %s407_s24 }
  0x5c   : > { %569 = dma.done.wait (%p802_p12), %s203_s22, 256  }
  0x5d   : > { %571 = vsyncadd (%p802_p12), %s203_s22, 4294967040  ;;  %s211_s25 = sand.u32 1, %s635_s16   ;;  %s215_s11 = scalar_lea.vmem [#allocation4], %s407_s24 }
  0x5e   : > { %s212_s9 = scalar_lea.sflag [#allocation5], %s211_s25 }
  0x5f   : > { %573 = dma.done.wait (%p802_p12), %s212_s9, 512  }
  0x60   : > { %575 = vsyncadd (%p802_p12), %s212_s9, 4294966784  ;;  %p256_p8 = scmp.lt.s32.totalorder %s635_s16, 1  ;;  %v260_v0 = vld [vmem:[%s206_s6] sm:$0xff]  ;;  %v261_v1 = vld [vmem:[%s206_s6 + $0x8] sm:$0xff]  ;;  %s224_s5 = scalar_lea.vmem [#allocation6], %s407_s24  ;;  %v595_v8 = vmov 0.0  }
  0x61   : > { %v262_v2 = vld [vmem:[%s215_s11] sm:$0xff]  ;;  %v263_v3 = vld [vmem:[%s215_s11 + $0x8] sm:$0xff] }
  0x62   : > { %s808_s16 = smov (!%p256_p8, %s635_s16), 1  ;;  %v264_v4 = vld [vmem:[%s224_s5] sm:$0xff]  ;;  %v265_v5 = vld [vmem:[%s224_s5 + $0x8] sm:$0xff]  ;;  %vm272_vm0 = vcmp.ne.f32.partialorder %v262_v2, 0.0  ;;  %v276_v6 = vsub.f32 %v260_v0, %v262_v2  ;;  %vm273_vm3 = vcmp.ne.f32.partialorder %v263_v3, 0.0  ;;  %v277_v7 = vsub.f32 %v261_v1, %v263_v3 }
  0x63   : > { %vm266_vm1 = vcmp.ne.f32.partialorder %v264_v4, 0.0  ;;  %vm267_vm2 = vcmp.ne.f32.partialorder %v265_v5, 0.0  ;;  %s410_s21 = sshll.u32 %s808_s16, 3 }
  0x64   : > { %v411_v9 = vsel %vm266_vm1, 1.0, %v595_v8  ;;  %v412_v10 = vsel %vm267_vm2, 1.0, %v595_v8  ;;  %v278_v11 = vmul.f32 %v276_v6, %v276_v6  ;;  %v279_v14 = vmul.f32 %v277_v7, %v277_v7  ;;  %s259_s12 = scalar_lea.vmem %s793_s3, %s410_s21 }
  0x65   : > { %v274_v12 = vsel %vm272_vm0, %v411_v9, 0.0  ;;  %v275_v13 = vsel %vm273_vm3, %v412_v10, 0.0 }
  0x66   : > { %v280_v15 = vmul.f32 %v278_v11, %v274_v12  ;;  %v281_v16 = vmul.f32 %v279_v14, %v275_v13 }
  0x68   : > { %v284_v17 = vadd.f32 %v281_v16, %v280_v15 }
  0x6a   : > { %285 = vst [vmem:[%s259_s12] sm:$0xff] %v284_v17 }
  0x6b PF: > { %p16_p2 = scmp.ge.s32.totalorder %s638_s17, 4   ;;  %s803_s12 = smov %s582_s13 }
  0x6c   : > { %s804_s13 = smov %s586_s14  ;;  %s805_s14 = smov %s648_s20 }
  0x6d   : > { %s806_s15 = smov %s638_s17  ;;  %18 = sbr.rel (!%p16_p2) target bundleno = 5 (0x5), region = 96 }
  0x72   :  { %305 = vsyncpa [#allocation3], 1 }
  0x73   :  { %307 = vsyncpa [#allocation3 + $0x1], 1 }
  0x74   :  { %308 = vsyncpa [#allocation5], 1 }
  0x75   :  { %310 = vsyncpa [#allocation5 + $0x1], 1 }

</bundles_post_ra>
